<compile_context>
chip_gen: v5e
topology: v5e:2x2
jax: 0.10.0
libtpu: 0.0.40
codegen_flags: <defaults>
</compile_context>

<pallas_src>
import jax
import jax.numpy as jnp
import numpy as np
from jax.experimental import pallas as pl
from jax.experimental.pallas import tpu as pltpu

IN_FEATURES = 5
OUT_FEATURES = 40

FOLD = 16                          # batch rows folded per super-row
K_FOLD = FOLD * IN_FEATURES        # 80  lanes on the contraction side
N_FOLD = FOLD * OUT_FEATURES       # 640 lanes (= 5 * 128) -> lane-dense stores
MAX_SUPER_ROWS = 1024              # 1024 super-rows = 16384 original rows/step


def _round_up(n, m):
    return ((n + m - 1) // m) * m


def _linear_kernel(x_ref, w_ref, b_ref, o_ref):
    # x_ref: (TBR, 80)   VMEM batch tile (auto double-buffered)
    # w_ref: (80, 640)   VMEM-resident block-diagonal weight
    # b_ref: (1, 640)    VMEM-resident tiled bias
    # o_ref: (TBR, 640)  lane-dense output tile
    acc = jnp.dot(x_ref[...], w_ref[...], preferred_element_type=jnp.float32)
    o_ref[...] = (acc + b_ref[...]).astype(o_ref.dtype)


def prepare_params(weight, bias):
    """One-time param prep (outside the forward path).

    weight: (40, 5) PyTorch layout -> BigW (80, 640), block-diagonal with W.T
    bias:   (40,)                  -> BigB (1, 640) = bias tiled FOLD times
    """
    wt = weight.T                                   # (5, 40)
    eye = jnp.eye(FOLD, dtype=wt.dtype)             # (16, 16)
    # bigw[5*s + k, 40*t + n] = delta(s, t) * W[n, k]
    bigw = jnp.einsum("st,kn->sktn", eye, wt).reshape(K_FOLD, N_FOLD)
    bigb = jnp.tile(bias, FOLD).reshape(1, N_FOLD)
    return bigw, bigb


def linear_regression_forward(x, bigw, bigb):
    """x: (B, 5) f32; bigw: (80, 640); bigb: (1, 640) -> (B, 40) f32."""
    B = x.shape[0]
    padded_b = _round_up(B, FOLD)
    if padded_b != B:
        # Pad only to a multiple of FOLD (<=15 rows), never to a full tile.
        x = jnp.pad(x, ((0, padded_b - B), (0, 0)))

    n_super = padded_b // FOLD
    # Free (contiguous, row-major) re-view of the batch into super-rows.
    x_f = x.reshape(n_super, K_FOLD)

    tbr = min(MAX_SUPER_ROWS, n_super)   # either full array or multiple of 8
    grid = pl.cdiv(n_super, tbr)         # ragged last block masked by Pallas

    out_f = pl.pallas_call(
        _linear_kernel,
        out_shape=jax.ShapeDtypeStruct((n_super, N_FOLD), x.dtype),
        grid_spec=pltpu.PrefetchScalarGridSpec(
            num_scalar_prefetch=0,
            grid=(grid,),
            in_specs=[
                pl.BlockSpec((tbr, K_FOLD), lambda i: (i, 0)),
                pl.BlockSpec((K_FOLD, N_FOLD), lambda i: (0, 0)),
                pl.BlockSpec((1, N_FOLD), lambda i: (0, 0)),
            ],
            out_specs=pl.BlockSpec((tbr, N_FOLD), lambda i: (i, 0)),
        ),
        compiler_params=pltpu.CompilerParams(
            dimension_semantics=("parallel",),
            vmem_limit_bytes=32 * 1024 * 1024,
        ),
    )(x_f, bigw, bigb)

    # Free re-view back to (padded_b, 40); slice only if we padded.
    out = out_f.reshape(padded_b, OUT_FEATURES)
    if padded_b != B:
        out = out[:B]
    return out


if __name__ == "__main__":
    key = jax.random.PRNGKey(0)
    k_x, k_w, k_b, k_x2 = jax.random.split(key, 4)

    # Deterministic init mimicking nn.Linear's uniform(-1/sqrt(5), 1/sqrt(5)).
    bound = 1.0 / jnp.sqrt(jnp.float32(IN_FEATURES))
    weight = jax.random.uniform(
        k_w, (OUT_FEATURES, IN_FEATURES), jnp.float32, -bound, bound
    )
    bias = jax.random.uniform(k_b, (OUT_FEATURES,), jnp.float32, -bound, bound)

    # Params prepared ONCE, outside the forward path.
    bigw, bigb = prepare_params(weight, bias)

    fwd = jax.jit(linear_regression_forward)

    w64 = np.asarray(weight, dtype=np.float64)
    b64 = np.asarray(bias, dtype=np.float64)

    # Case 1: batch a multiple of FOLD -> zero-copy fast path.
    B1 = 32
    x1 = jax.random.normal(k_x, (B1, IN_FEATURES), jnp.float32)
    out1 = jax.block_until_ready(fwd(x1, bigw, bigb))
    ref1 = np.asarray(x1, dtype=np.float64) @ w64.T + b64
    assert out1.shape == (B1, OUT_FEATURES)
    assert np.allclose(np.asarray(out1), ref1, atol=1e-4, rtol=1e-4)

    # Case 2: ragged batch -> exercises the pad-to-16 path.
    B2 = 13
    x2 = jax.random.normal(k_x2, (B2, IN_FEATURES), jnp.float32)
    out2 = jax.block_until_ready(fwd(x2, bigw, bigb))
    ref2 = np.asarray(x2, dtype=np.float64) @ w64.T + b64
    assert out2.shape == (B2, OUT_FEATURES)
    assert np.allclose(np.asarray(out2), ref2, atol=1e-4, rtol=1e-4)

    print("KERNEL_OK")
</pallas_src>

<mosaic_0001>
module attributes {stable_mosaic.version = 11 : i64} {
  func.func @_linear_kernel(%arg0: i32, %arg1: memref<2x80xf32, #tpu.memory_space<vmem>>, %arg2: memref<80x640xf32, #tpu.memory_space<vmem>>, %arg3: memref<1x640xf32, #tpu.memory_space<vmem>>, %arg4: memref<2x640xf32, #tpu.memory_space<vmem>>) attributes {dimension_semantics = [#tpu.dimension_semantics<parallel>], iteration_bounds = array<i64: 1>, scalar_prefetch = 0 : i64, scratch_operands = 0 : i64, tpu.core_type = #tpu.core_type<tc>, window_params = [{transform_indices = @transform_0, window_bounds = array<i64: 2, 80>}, {pipeline_mode = #tpu.pipeline_mode<synchronous>, transform_indices = @transform_1, window_bounds = array<i64: 80, 640>}, {pipeline_mode = #tpu.pipeline_mode<synchronous>, transform_indices = @transform_2, window_bounds = array<i64: 1, 640>}, {transform_indices = @transform_3, window_bounds = array<i64: 2, 640>}]} {
    %c0 = arith.constant 0 : index
    %c0_0 = arith.constant 0 : index
    %0 = vector.load %arg1[%c0, %c0_0] : memref<2x80xf32, #tpu.memory_space<vmem>>, vector<2x80xf32>
    %c0_1 = arith.constant 0 : index
    %c0_2 = arith.constant 0 : index
    %1 = vector.load %arg2[%c0_1, %c0_2] : memref<80x640xf32, #tpu.memory_space<vmem>>, vector<80x640xf32>
    %cst = arith.constant dense<0.000000e+00> : vector<2x640xf32>
    %2 = tpu.matmul %0, %1, %cst {dimension_numbers = #tpu.dot_dimension_numbers<[1], [0], [0], [1], [0, 0, 1, 1], [], []>} : vector<2x80xf32>, vector<80x640xf32>, vector<2x640xf32> -> vector<2x640xf32>
    %c0_3 = arith.constant 0 : index
    %c0_4 = arith.constant 0 : index
    %3 = vector.load %arg3[%c0_3, %c0_4] : memref<1x640xf32, #tpu.memory_space<vmem>>, vector<1x640xf32>
    %4 = vector.broadcast %3 : vector<1x640xf32> to vector<2x640xf32>
    %5 = arith.addf %2, %4 : vector<2x640xf32>
    %c0_5 = arith.constant 0 : index
    %c0_6 = arith.constant 0 : index
    %6 = vector.load %arg4[%c0_5, %c0_6] : memref<2x640xf32, #tpu.memory_space<vmem>>, vector<2x640xf32>
    tpu.vector_store %arg4[%c0_5, %c0_6], %5 {strides = array<i32>} : memref<2x640xf32, #tpu.memory_space<vmem>>, vector<2x640xf32>,
    return
  }
  func.func @transform_0(%arg0: i32) -> (i32, i32) {
    %c0_i32 = arith.constant 0 : i32
    %c0_i32_0 = arith.constant 0 : i32
    return %arg0, %c0_i32 : i32, i32
  }
  func.func @transform_1(%arg0: i32) -> (i32, i32) {
    %c0_i32 = arith.constant 0 : i32
    %c0_i32_0 = arith.constant 0 : i32
    %c0_i32_1 = arith.constant 0 : i32
    return %c0_i32, %c0_i32_0 : i32, i32
  }
  func.func @transform_2(%arg0: i32) -> (i32, i32) {
    %c0_i32 = arith.constant 0 : i32
    %c0_i32_0 = arith.constant 0 : i32
    %c0_i32_1 = arith.constant 0 : i32
    return %c0_i32, %c0_i32_0 : i32, i32
  }
  func.func @transform_3(%arg0: i32) -> (i32, i32) {
    %c0_i32 = arith.constant 0 : i32
    %c0_i32_0 = arith.constant 0 : i32
    return %arg0, %c0_i32 : i32, i32
  }
}

</mosaic_0001>

<bundles_post_ra>
// kernel: linear_regression_forward.1
= control target key start
LH: loop header
LB: loop body
LE: loop exit
PB: predicated region body
PF: predicated region fallthrough
CT: control target
= control target key end

     0   :  { %8 = vsyncpa [#allocation3], 0  ;;  %s252_s15 = smov [#allocation2]   ;;  %s253_s17 = smov 640   ;;  %s295_s0 = inlined_call_operand.vmem [shape: f32[2,80], index: 0, kind: input, shape index: {}]   ;;  %s296_s1 = inlined_call_operand.hbm [shape: f32[80,640], index: 1, kind: input, shape index: {}]   ;;  %s297_s2 = inlined_call_operand.vmem [shape: f32[1,640], index: 2, kind: input, shape index: {}]   ;;  %s298_s3 = inlined_call_operand.vmem [shape: f32[2,640], index: 3, kind: output, shape index: {}]  }
   0x1   :  { %s15_s14 = sshll.u32 %s296_s1, 4  ;;  %s17_s16 = sshll.u32 %s252_s15, 4  ;;  %s16_s14 = int_to_ptr.hbm [resolvable:$true] %s15_s14  ;;  %s18_s16 = int_to_ptr.vmem [resolvable:$true] %s17_s16 }
   0x2   :  { %s254_s18 = smov 40  }
   0x3   :  { %23 = dma.hbm_to_vmem [thread:$0]  %s16_s14, 6400, %s18_s16, [#allocation3], %s253_s17, %s253_s17, %s254_s18  }
   0x4   :  { %250 = dma.done.wait [#allocation3], 6400  }
   0x5   :  { %251 = vsyncadd [#allocation3], 4294960896  ;;  %v76_v0 = vld [vmem:[#allocation2 + $0x168] sm:$0xff]  ;;  %v71_v1 = vld [vmem:[#allocation2 + $0x140] sm:$0xff]  ;;  %vm93_vm0 = vcmask 654336   ;;  %vm204_vm1 = vcmask 1041408  }
   0x6   :  { %v78_v2 = vld [vmem:[#allocation2 + $0x178] sm:$0xff]  ;;  %103 = vmatpush.msra.mxu0 %v76_v0  ;;  %v79_v3 = vld [vmem:[#allocation2 + $0x180] sm:$0xff]  ;;  %v73_v4 = vld [vmem:[#allocation2 + $0x150] sm:$0xff]  ;;  %vm206_vm2 = vcmask 1045508   ;;  %vm208_vm3 = vcmask 1043456  }
   0x7   :  { %143 = vmatpush.msra.mxu2 %v78_v2  ;;  %163 = vmatpush.msra.mxu3 %v79_v3  ;;  %v66_v5 = vld [vmem:[#allocation2 + $0x118] sm:$0xff]  ;;  %v68_v7 = vld [vmem:[#allocation2 + $0x128] sm:$0xff]  ;;  %v69_v8 = vld [vmem:[#allocation2 + $0x130] sm:$0xff] }
   0x8   :  { %v74_v6 = vld [vmem:[#allocation2 + $0x158] sm:$0xff]  ;;  %104 = vmatpush.msra.mxu0 %v71_v1  ;;  %v77_v9 = vld [vmem:[#allocation2 + $0x170] sm:$0xff]  ;;  %v63_v11 = vld [vmem:[#allocation2 + $0x100] sm:$0xff] }
   0x9   :  { %144 = vmatpush.msra.mxu2 %v73_v4  ;;  %164 = vmatpush.msra.mxu3 %v74_v6  ;;  %v61_v10 = vld [vmem:[#allocation2 + $0xf0] sm:$0xff]  ;;  %v64_v12 = vld [vmem:[#allocation2 + $0x108] sm:$0xff]  ;;  %v58_v15 = vld [vmem:[#allocation2 + $0xd8] sm:$0xff] }
   0xa   :  { %123 = vmatpush.msra.mxu1 %v77_v9  ;;  %105 = vmatpush.msra.mxu0 %v66_v5  ;;  %v72_v13 = vld [vmem:[#allocation2 + $0x148] sm:$0xff]  ;;  %v67_v16 = vld [vmem:[#allocation2 + $0x120] sm:$0xff]  ;;  %v62_v18 = vld [vmem:[#allocation2 + $0xf8] sm:$0xff] }
   0xb   :  { %145 = vmatpush.msra.mxu2 %v68_v7  ;;  %165 = vmatpush.msra.mxu3 %v69_v8  ;;  %v56_v14 = vld [vmem:[#allocation2 + $0xc8] sm:$0xff]  ;;  %v59_v17 = vld [vmem:[#allocation2 + $0xe0] sm:$0xff]  ;;  %v53_v20 = vld [vmem:[#allocation2 + $0xb0] sm:$0xff] }
   0xc   :  { %124 = vmatpush.msra.mxu1 %v72_v13  ;;  %106 = vmatpush.msra.mxu0 %v61_v10  ;;  %v51_v19 = vld [vmem:[#allocation2 + $0xa0] sm:$0xff]  ;;  %v54_v21 = vld [vmem:[#allocation2 + $0xb8] sm:$0xff]  ;;  %v57_v22 = vld [vmem:[#allocation2 + $0xd0] sm:$0xff] }
   0xd   :  { %146 = vmatpush.msra.mxu2 %v63_v11  ;;  %166 = vmatpush.msra.mxu3 %v64_v12  ;;  %v46_v23 = vld [vmem:[#allocation2 + $0x78] sm:$0xff]  ;;  %v48_v24 = vld [vmem:[#allocation2 + $0x88] sm:$0xff]  ;;  %v49_v25 = vld [vmem:[#allocation2 + $0x90] sm:$0xff] }
   0xe   :  { %125 = vmatpush.msra.mxu1 %v67_v16  ;;  %107 = vmatpush.msra.mxu0 %v56_v14  ;;  %v52_v26 = vld [vmem:[#allocation2 + $0xa8] sm:$0xff]  ;;  %v41_v27 = vld [vmem:[#allocation2 + $0x50] sm:$0xff]  ;;  %v43_v28 = vld [vmem:[#allocation2 + $0x60] sm:$0xff] }
   0xf   :  { %147 = vmatpush.msra.mxu2 %v58_v15  ;;  %167 = vmatpush.msra.mxu3 %v59_v17  ;;  %v44_v29 = vld [vmem:[#allocation2 + $0x68] sm:$0xff]  ;;  %v47_v30 = vld [vmem:[#allocation2 + $0x80] sm:$0xff]  ;;  %v38_v32 = vld [vmem:[#allocation2 + $0x38] sm:$0xff] }
  0x10   :  { %126 = vmatpush.msra.mxu1 %v62_v18  ;;  %108 = vmatpush.msra.mxu0 %v51_v19  ;;  %v36_v31 = vld [vmem:[#allocation2 + $0x28] sm:$0xff]  ;;  %v39_v33 = vld [vmem:[#allocation2 + $0x40] sm:$0xff]  ;;  %v42_v34 = vld [vmem:[#allocation2 + $0x58] sm:$0xff] }
  0x11   :  { %148 = vmatpush.msra.mxu2 %v53_v20  ;;  %168 = vmatpush.msra.mxu3 %v54_v21  ;;  %v31_v35 = vld [vmem:[#allocation2] sm:$0xff]  ;;  %v33_v36 = vld [vmem:[#allocation2 + $0x10] sm:$0xff]  ;;  %v80_v37 = vld [vmem:[#allocation2 + $0x188] sm:$0xff] }
  0x12   :  { %127 = vmatpush.msra.mxu1 %v57_v22  ;;  %109 = vmatpush.msra.mxu0 %v46_v23  ;;  %v34_v38 = vld [vmem:[#allocation2 + $0x18] sm:$0xff]  ;;  %v30_v39 = vld [vmem:[%s295_s0] sm:$0x3]  ;;  %v37_v41 = vld [vmem:[#allocation2 + $0x30] sm:$0xff] }
  0x13   :  { %149 = vmatpush.msra.mxu2 %v48_v24  ;;  %169 = vmatpush.msra.mxu3 %v49_v25  ;;  %v75_v40 = vld [vmem:[#allocation2 + $0x160] sm:$0xff]  ;;  %v70_v42 = vld [vmem:[#allocation2 + $0x138] sm:$0xff]  ;;  %v32_v43 = vld [vmem:[#allocation2 + $0x8] sm:$0xff] }
  0x14   :  { %128 = vmatpush.msra.mxu1 %v52_v26  ;;  %110 = vmatpush.msra.mxu0 %v41_v27  ;;  %v65_v44 = vld [vmem:[#allocation2 + $0x110] sm:$0xff]  ;;  %v60_v45 = vld [vmem:[#allocation2 + $0xe8] sm:$0xff]  ;;  %v55_v46 = vld [vmem:[#allocation2 + $0xc0] sm:$0xff] }
  0x15   :  { %150 = vmatpush.msra.mxu2 %v43_v28  ;;  %170 = vmatpush.msra.mxu3 %v44_v29  ;;  %v50_v47 = vld [vmem:[#allocation2 + $0x98] sm:$0xff]  ;;  %v45_v48 = vld [vmem:[#allocation2 + $0x70] sm:$0xff]  ;;  %v40_v49 = vld [vmem:[#allocation2 + $0x48] sm:$0xff] }
  0x16   :  { %129 = vmatpush.msra.mxu1 %v47_v30  ;;  %111 = vmatpush.msra.mxu0 %v36_v31  ;;  %v35_v50 = vld [vmem:[#allocation2 + $0x20] sm:$0xff] }
  0x17   :  { %151 = vmatpush.msra.mxu2 %v38_v32  ;;  %171 = vmatpush.msra.mxu3 %v39_v33  ;;  %v81_v51 = vld [vmem:[%s297_s2] sm:$0x1f] }
  0x18   :  { %130 = vmatpush.msra.mxu1 %v42_v34  ;;  %112 = vmatpush.msra.mxu0 %v31_v35  ;;  %v84_v52 = vperm.slane %v81_v51, 1  ;;  %v83_v53 = vperm.slane %v81_v51, 0  ;;  %v85_v55 = vperm.slane %v81_v51, 2  ;;  %v86_v56 = vperm.slane %v81_v51, 3 }
  0x19   :  { %152 = vmatpush.msra.mxu2 %v33_v36  ;;  %172 = vmatpush.msra.mxu3 %v34_v38  ;;  %v87_v6 = vperm.slane %v81_v51, 4 }
  0x1a   :  { %183 = vmatpush.msrb.mxu0 %v80_v37  ;;  %220 = vmatmul.msk.f32.vlgmr.msra.gmra.mxu2 %vm93_vm0, %v30_v39 }
  0x1b   :  { %221 = vmatmul.msk.f32.vlgmr.msra.gmra.mxu3 %vm93_vm0, %v30_v39  ;;  %131 = vmatpush.msra.mxu1 %v37_v41 }
  0x1c   :  { %184 = vmatpush.msrb.mxu0 %v75_v40 }
  0x1d   :  { %218 = vmatmul.msk.f32.vlgmr.msra.gmra.mxu0 %vm93_vm0, %v30_v39  ;;  %132 = vmatpush.msra.mxu1 %v32_v43 }
  0x1e   :  { %185 = vmatpush.msrb.mxu0 %v70_v42  ;;  %219 = vmatmul.msk.f32.vlgmr.msra.gmra.mxu1 %vm93_vm0, %v30_v39 }
  0x20   :  { %186 = vmatpush.msrb.mxu0 %v65_v44 }
  0x22   :  { %187 = vmatpush.msrb.mxu0 %v60_v45 }
  0x24   :  { %188 = vmatpush.msrb.mxu0 %v55_v46 }
  0x26   :  { %189 = vmatpush.msrb.mxu0 %v50_v47 }
  0x28   :  { %190 = vmatpush.msrb.mxu0 %v45_v48 }
  0x2a   :  { %191 = vmatpush.msrb.mxu0 %v40_v49 }
  0x2c   :  { %192 = vmatpush.msrb.mxu0 %v35_v50 }
  0x2d   :  { %222 = vmatmul.msk.f32.vlgmr.msrb.gmra.mxu0 %vm93_vm0, %v30_v39 }
  0x9a   :  { %v114_v54 = vpop.f32.mrf.mxu0 }
  0x9b   :  { %v134_v57 = vpop.f32.mrf.mxu1  ;;  %v115_v59 = vadd.f32 %v114_v54, %v83_v53 }
  0x9c   :  { %v135_v58 = vadd.f32 %v134_v57, %v84_v52 }
  0x9d   :  { %v154_v60 = vpop.f32.mrf.mxu2 }
  0x9e   :  { %v174_v61 = vpop.f32.mrf.mxu3  ;;  %v201_v62 = vrot.slane %v135_v58, 6  ;;  %v155_v63 = vadd.f32 %v154_v60, %v85_v55 }
  0x9f   :  { %v175_v0 = vadd.f32 %v174_v61, %v86_v56 }
  0xa0   :  { %v202_v1 = vrot.slane %v155_v63, 4  ;;  %v205_v3 = vsel %vm204_vm1, %v115_v59, %v201_v62 }
  0xa1   :  { %v203_v2 = vrot.slane %v175_v0, 2 }
  0xa3   :  { %v207_v4 = vsel %vm206_vm2, %v202_v1, %v203_v2 }
  0xa4   :  { %v209_v5 = vsel %vm208_vm3, %v205_v3, %v207_v4 }
  0xa5   :  { %211 = vst [vmem:[%s298_s3] sm:$0xff] %v209_v5 }
  0xaa   :  { %v194_v7 = vpop.f32.mrf.mxu0 }
  0xab   :  { %v195_v8 = vadd.f32 %v194_v7, %v87_v6 }
  0xad   :  { %212 = vst [vmem:[%s298_s3 + $0x8] sm:$0x3] %v195_v8 }
  0xae   :  { %217 = vsyncpa [#allocation3], 1 }

</bundles_post_ra>
